<compile_context>
chip_gen: v5e
topology: v5e:2x2
jax: 0.10.0
libtpu: 0.0.40
codegen_flags: <defaults>
</compile_context>

<pallas_src>
import functools

import jax
import jax.numpy as jnp
from jax.experimental import pallas as pl
from jax.experimental.pallas import tpu as pltpu

HIDDEN = 32
NUM_CLASSES = 3


def _critic_kernel(states_ref, w1_ref, rw_ref, rb_ref, out_ref):
    """Batched Critic forward.

    states_ref: int32 (TB, D)        class indices in {0,1,2}
    w1_ref:     f32   (3, D, 32)     w1 reordered so w1_ref[j] == w1[j::3, :]
    rw_ref:     f32   (32, 128)      [r1a_w | r1b_w | r2a_w | r2b_w]
    rb_ref:     f32   (8, 32)        rows: b1, r1a_b, r1b_b, r2a_b, r2b_b,
                                           wo_row, [bo, 0, ...], unused
    out_ref:    f32   (1, TB)        lane-dense row of values
    """
    st = states_ref[...]
    rw = rw_ref[...]
    rb = rb_ref[...]

    # Input projection. The flattened one-hot matmul
    #   emb @ W1, with emb[b, 3*i + j] = (state[b, i] == j)
    # is decomposed as sum_j (state == j) @ W1[j::3, :], so no repeat /
    # lane expansion is needed inside or outside the kernel.
    h = jnp.dot((st == 0).astype(jnp.float32), w1_ref[0],
                preferred_element_type=jnp.float32)
    h = h + jnp.dot((st == 1).astype(jnp.float32), w1_ref[1],
                    preferred_element_type=jnp.float32)
    h = h + jnp.dot((st == 2).astype(jnp.float32), w1_ref[2],
                    preferred_element_type=jnp.float32)
    h = h + rb[0:1, :]                                   # + b1

    def residual(x, wa, ba, wb, bb):
        t = jnp.maximum(
            jnp.dot(x, wa, preferred_element_type=jnp.float32) + ba, 0.0)
        t = jnp.maximum(
            jnp.dot(t, wb, preferred_element_type=jnp.float32) + bb, 0.0)
        return t + x

    h = residual(h, rw[:, 0:32],  rb[1:2, :], rw[:, 32:64],  rb[2:3, :])
    h = residual(h, rw[:, 64:96], rb[3:4, :], rw[:, 96:128], rb[4:5, :])

    # Output head, computed directly in the lane-dense orientation:
    #   (8, 32) @ (TB, 32)^T -> (8, TB), keep row 0.
    # wo is broadcast over 8 sublanes so every matmul operand is tile-aligned
    # (the MXU processes >= 8 rows per push anyway, so the extra rows are free).
    wo8 = jnp.broadcast_to(rb[5:6, :], (8, HIDDEN))      # (8, 32)
    bo = rb[6:7, 0:1]                                    # (1, 1)
    head = jax.lax.dot_general(
        wo8, h, (((1,), (1,)), ((), ())),
        preferred_element_type=jnp.float32)              # (8, TB)
    out_ref[...] = head[0:1, :] + bo


def pack_params(params):
    """Pack the 13 Linear params into 3 VMEM-friendly slabs."""
    S = params["w1"].shape[0]
    D = S // NUM_CLASSES
    # w1p[j, i, :] == w1[3*i + j, :]
    w1p = params["w1"].reshape(D, NUM_CLASSES, HIDDEN).transpose(1, 0, 2)
    rw = jnp.concatenate(
        [params["r1a_w"], params["r1b_w"], params["r2a_w"], params["r2b_w"]],
        axis=1)                                           # (32, 128)
    rb = jnp.zeros((8, HIDDEN), jnp.float32)
    rb = rb.at[0].set(params["b1"][0])
    rb = rb.at[1].set(params["r1a_b"][0])
    rb = rb.at[2].set(params["r1b_b"][0])
    rb = rb.at[3].set(params["r2a_b"][0])
    rb = rb.at[4].set(params["r2b_b"][0])
    rb = rb.at[5].set(params["wo"][:, 0])
    rb = rb.at[6, 0].set(params["bo"][0, 0])
    return w1p.astype(jnp.float32), rw.astype(jnp.float32), rb


@functools.partial(jax.jit, static_argnames=("block_b",))
def critic_forward_batched(states, w1p, rw, rb, *, block_b=256):
    """states: int (B, D) with values in {0,1,2}. Returns (B, 1) f32."""
    B, D = states.shape
    states = states.astype(jnp.int32)
    tb = min(block_b, B)
    pad = (-B) % tb
    if pad:
        states = jnp.concatenate(
            [states, jnp.zeros((pad, D), jnp.int32)], axis=0)
    Bp = B + pad

    out_row = pl.pallas_call(
        _critic_kernel,
        out_shape=jax.ShapeDtypeStruct((1, Bp), jnp.float32),
        grid_spec=pltpu.PrefetchScalarGridSpec(
            num_scalar_prefetch=0,
            grid=(Bp // tb,),
            in_specs=[
                pl.BlockSpec((tb, D), lambda b: (b, 0)),
                pl.BlockSpec((NUM_CLASSES, D, HIDDEN), lambda b: (0, 0, 0)),
                pl.BlockSpec((HIDDEN, 4 * HIDDEN), lambda b: (0, 0)),
                pl.BlockSpec((8, HIDDEN), lambda b: (0, 0)),
            ],
            out_specs=pl.BlockSpec((1, tb), lambda b: (0, b)),
        ),
        compiler_params=pltpu.CompilerParams(
            dimension_semantics=("parallel",)),
    )(states, w1p, rw, rb)

    # (1, Bp) and (Bp, 1) share the same linear layout -> free reshape.
    return out_row.reshape(Bp, 1)[:B]


def critic_forward(state_idx, w1p, rw, rb):
    """Original module semantics: state_idx int (D, 1) -> value (1, 1)."""
    D = state_idx.shape[0]
    # Broadcast the single state into an 8-row tile (min sublane count) so the
    # batched kernel can be reused; row 0 is the answer.
    st = jnp.broadcast_to(state_idx.reshape(1, D), (8, D)).astype(jnp.int32)
    vals = critic_forward_batched(st, w1p, rw, rb, block_b=8)
    return vals[0:1, :]


def init_params(key, state_space):
    """Deterministic init mimicking nn.Linear default (U(-1/sqrt(fan_in), +))."""
    def linear(k, fan_in, fan_out):
        kw, kb = jax.random.split(k)
        bound = 1.0 / jnp.sqrt(fan_in)
        w = jax.random.uniform(kw, (fan_in, fan_out), jnp.float32, -bound, bound)
        b = jax.random.uniform(kb, (1, fan_out), jnp.float32, -bound, bound)
        return w, b

    keys = jax.random.split(key, 6)
    p = {}
    p["w1"], p["b1"] = linear(keys[0], state_space, HIDDEN)
    p["r1a_w"], p["r1a_b"] = linear(keys[1], HIDDEN, HIDDEN)
    p["r1b_w"], p["r1b_b"] = linear(keys[2], HIDDEN, HIDDEN)
    p["r2a_w"], p["r2a_b"] = linear(keys[3], HIDDEN, HIDDEN)
    p["r2b_w"], p["r2b_b"] = linear(keys[4], HIDDEN, HIDDEN)
    p["wo"], p["bo"] = linear(keys[5], HIDDEN, 1)
    return p


def critic_reference_batched(states, params):
    """Plain-JAX reference mirroring the PyTorch forward, one state per row."""
    B, D = states.shape
    one_hot = (states[..., None] == jnp.arange(3)).astype(jnp.float32)  # (B,D,3)
    emb = one_hot.reshape(B, 3 * D)
    h = emb @ params["w1"] + params["b1"]
    t = jnp.maximum(h @ params["r1a_w"] + params["r1a_b"], 0.0)
    t = jnp.maximum(t @ params["r1b_w"] + params["r1b_b"], 0.0)
    h = t + h
    t = jnp.maximum(h @ params["r2a_w"] + params["r2a_b"], 0.0)
    t = jnp.maximum(t @ params["r2b_w"] + params["r2b_b"], 0.0)
    h = t + h
    return h @ params["wo"] + params["bo"]


def critic_reference(state_idx, params):
    return critic_reference_batched(state_idx.reshape(1, -1), params)


if __name__ == "__main__":
    state_space_dim = 8                      # args.state_space_dim
    state_space = state_space_dim * 3        # = 24

    key = jax.random.PRNGKey(0)
    k_params, k_state, k_batch = jax.random.split(key, 3)

    params = init_params(k_params, state_space)
    w1p, rw, rb = pack_params(params)

    # 1) Single state, exactly the PyTorch module's forward (batch = 1).
    state_idx = jax.random.randint(k_state, (state_space_dim, 1), 0, 3, jnp.int32)
    value = jax.block_until_ready(critic_forward(state_idx, w1p, rw, rb))
    ref = critic_reference(state_idx, params)
    assert value.shape == (1, 1)
    assert jnp.allclose(value, ref, atol=1e-5, rtol=1e-5), (value, ref)

    # 2) Batched states, tile-multiple batch (grid = (2,), megacore-splittable).
    states = jax.random.randint(
        k_batch, (256, state_space_dim), 0, 3, jnp.int32)
    values = jax.block_until_ready(
        critic_forward_batched(states, w1p, rw, rb, block_b=128))
    refs = critic_reference_batched(states, params)
    assert values.shape == (256, 1)
    assert jnp.allclose(values, refs, atol=1e-5, rtol=1e-5)

    # 3) Ragged batch (exercises the padding path).
    states3 = jax.random.randint(
        jax.random.PRNGKey(7), (200, state_space_dim), 0, 3, jnp.int32)
    values3 = jax.block_until_ready(
        critic_forward_batched(states3, w1p, rw, rb, block_b=128))
    refs3 = critic_reference_batched(states3, params)
    assert values3.shape == (200, 1)
    assert jnp.allclose(values3, refs3, atol=1e-5, rtol=1e-5)

    print("KERNEL_OK")
</pallas_src>

<mosaic_0001>
module attributes {stable_mosaic.version = 11 : i64} {
  func.func @_critic_kernel(%arg0: i32, %arg1: memref<8x8xi32, #tpu.memory_space<vmem>>, %arg2: memref<3x8x32xf32, #tpu.memory_space<vmem>>, %arg3: memref<32x128xf32, #tpu.memory_space<vmem>>, %arg4: memref<8x32xf32, #tpu.memory_space<vmem>>, %arg5: memref<1x8xf32, #tpu.memory_space<vmem>>) attributes {dimension_semantics = [#tpu.dimension_semantics<parallel>], iteration_bounds = array<i64: 1>, scalar_prefetch = 0 : i64, scratch_operands = 0 : i64, tpu.core_type = #tpu.core_type<tc>, window_params = [{transform_indices = @transform_0, window_bounds = array<i64: 8, 8>}, {pipeline_mode = #tpu.pipeline_mode<synchronous>, transform_indices = @transform_1, window_bounds = array<i64: 3, 8, 32>}, {pipeline_mode = #tpu.pipeline_mode<synchronous>, transform_indices = @transform_2, window_bounds = array<i64: 32, 128>}, {pipeline_mode = #tpu.pipeline_mode<synchronous>, transform_indices = @transform_3, window_bounds = array<i64: 8, 32>}, {transform_indices = @transform_4, window_bounds = array<i64: 1, 8>}]} {
    %c0 = arith.constant 0 : index
    %c0_0 = arith.constant 0 : index
    %0 = vector.load %arg1[%c0, %c0_0] : memref<8x8xi32, #tpu.memory_space<vmem>>, vector<8x8xi32>
    %c0_1 = arith.constant 0 : index
    %c0_2 = arith.constant 0 : index
    %1 = vector.load %arg3[%c0_1, %c0_2] : memref<32x128xf32, #tpu.memory_space<vmem>>, vector<32x128xf32>
    %c0_3 = arith.constant 0 : index
    %c0_4 = arith.constant 0 : index
    %2 = vector.load %arg4[%c0_3, %c0_4] : memref<8x32xf32, #tpu.memory_space<vmem>>, vector<8x32xf32>
    %c0_i32 = arith.constant 0 : i32
    %3 = vector.broadcast %c0_i32 : i32 to vector<8x8xi32>
    %4 = arith.cmpi eq, %0, %3 : vector<8x8xi32>
    %5 = arith.extui %4 : vector<8x8xi1> to vector<8x8xi32>
    %6 = arith.sitofp %5 : vector<8x8xi32> to vector<8x8xf32>
    %c0_5 = arith.constant 0 : index
    %c0_6 = arith.constant 0 : index
    %c0_7 = arith.constant 0 : index
    %7 = vector.load %arg2[%c0_5, %c0_6, %c0_7] : memref<3x8x32xf32, #tpu.memory_space<vmem>>, vector<1x8x32xf32>
    %8 = vector.shape_cast %7 : vector<1x8x32xf32> to vector<8x32xf32>
    %cst = arith.constant dense<0.000000e+00> : vector<8x32xf32>
    %9 = tpu.matmul %6, %8, %cst {dimension_numbers = #tpu.dot_dimension_numbers<[1], [0], [0], [1], [0, 0, 1, 1], [], []>} : vector<8x8xf32>, vector<8x32xf32>, vector<8x32xf32> -> vector<8x32xf32>
    %c1_i32 = arith.constant 1 : i32
    %10 = vector.broadcast %c1_i32 : i32 to vector<8x8xi32>
    %11 = arith.cmpi eq, %0, %10 : vector<8x8xi32>
    %12 = arith.extui %11 : vector<8x8xi1> to vector<8x8xi32>
    %13 = arith.sitofp %12 : vector<8x8xi32> to vector<8x8xf32>
    %c1 = arith.constant 1 : index
    %c0_8 = arith.constant 0 : index
    %c0_9 = arith.constant 0 : index
    %14 = vector.load %arg2[%c1, %c0_8, %c0_9] : memref<3x8x32xf32, #tpu.memory_space<vmem>>, vector<1x8x32xf32>
    %15 = vector.shape_cast %14 : vector<1x8x32xf32> to vector<8x32xf32>
    %cst_10 = arith.constant dense<0.000000e+00> : vector<8x32xf32>
    %16 = tpu.matmul %13, %15, %cst_10 {dimension_numbers = #tpu.dot_dimension_numbers<[1], [0], [0], [1], [0, 0, 1, 1], [], []>} : vector<8x8xf32>, vector<8x32xf32>, vector<8x32xf32> -> vector<8x32xf32>
    %17 = arith.addf %9, %16 : vector<8x32xf32>
    %c2_i32 = arith.constant 2 : i32
    %18 = vector.broadcast %c2_i32 : i32 to vector<8x8xi32>
    %19 = arith.cmpi eq, %0, %18 : vector<8x8xi32>
    %20 = arith.extui %19 : vector<8x8xi1> to vector<8x8xi32>
    %21 = arith.sitofp %20 : vector<8x8xi32> to vector<8x8xf32>
    %c2 = arith.constant 2 : index
    %c0_11 = arith.constant 0 : index
    %c0_12 = arith.constant 0 : index
    %22 = vector.load %arg2[%c2, %c0_11, %c0_12] : memref<3x8x32xf32, #tpu.memory_space<vmem>>, vector<1x8x32xf32>
    %23 = vector.shape_cast %22 : vector<1x8x32xf32> to vector<8x32xf32>
    %cst_13 = arith.constant dense<0.000000e+00> : vector<8x32xf32>
    %24 = tpu.matmul %21, %23, %cst_13 {dimension_numbers = #tpu.dot_dimension_numbers<[1], [0], [0], [1], [0, 0, 1, 1], [], []>} : vector<8x8xf32>, vector<8x32xf32>, vector<8x32xf32> -> vector<8x32xf32>
    %25 = arith.addf %17, %24 : vector<8x32xf32>
    %26 = vector.extract_strided_slice %2 {offsets = [0, 0], sizes = [1, 32], strides = [1, 1]} : vector<8x32xf32> to vector<1x32xf32>
    %27 = vector.broadcast %26 : vector<1x32xf32> to vector<8x32xf32>
    %28 = arith.addf %25, %27 : vector<8x32xf32>
    %29 = vector.extract_strided_slice %1 {offsets = [0, 0], sizes = [32, 32], strides = [1, 1]} : vector<32x128xf32> to vector<32x32xf32>
    %30 = vector.extract_strided_slice %2 {offsets = [1, 0], sizes = [1, 32], strides = [1, 1]} : vector<8x32xf32> to vector<1x32xf32>
    %31 = vector.extract_strided_slice %1 {offsets = [0, 32], sizes = [32, 32], strides = [1, 1]} : vector<32x128xf32> to vector<32x32xf32>
    %32 = vector.extract_strided_slice %2 {offsets = [2, 0], sizes = [1, 32], strides = [1, 1]} : vector<8x32xf32> to vector<1x32xf32>
    %cst_14 = arith.constant dense<0.000000e+00> : vector<8x32xf32>
    %33 = tpu.matmul %28, %29, %cst_14 {dimension_numbers = #tpu.dot_dimension_numbers<[1], [0], [0], [1], [0, 0, 1, 1], [], []>} : vector<8x32xf32>, vector<32x32xf32>, vector<8x32xf32> -> vector<8x32xf32>
    %34 = vector.broadcast %30 : vector<1x32xf32> to vector<8x32xf32>
    %35 = arith.addf %33, %34 : vector<8x32xf32>
    %cst_15 = arith.constant 0.000000e+00 : f32
    %36 = vector.broadcast %cst_15 : f32 to vector<8x32xf32>
    %37 = arith.maximumf %35, %36 : vector<8x32xf32>
    %cst_16 = arith.constant dense<0.000000e+00> : vector<8x32xf32>
    %38 = tpu.matmul %37, %31, %cst_16 {dimension_numbers = #tpu.dot_dimension_numbers<[1], [0], [0], [1], [0, 0, 1, 1], [], []>} : vector<8x32xf32>, vector<32x32xf32>, vector<8x32xf32> -> vector<8x32xf32>
    %39 = vector.broadcast %32 : vector<1x32xf32> to vector<8x32xf32>
    %40 = arith.addf %38, %39 : vector<8x32xf32>
    %cst_17 = arith.constant 0.000000e+00 : f32
    %41 = vector.broadcast %cst_17 : f32 to vector<8x32xf32>
    %42 = arith.maximumf %40, %41 : vector<8x32xf32>
    %43 = arith.addf %42, %28 : vector<8x32xf32>
    %44 = vector.extract_strided_slice %1 {offsets = [0, 64], sizes = [32, 32], strides = [1, 1]} : vector<32x128xf32> to vector<32x32xf32>
    %45 = vector.extract_strided_slice %2 {offsets = [3, 0], sizes = [1, 32], strides = [1, 1]} : vector<8x32xf32> to vector<1x32xf32>
    %46 = vector.extract_strided_slice %1 {offsets = [0, 96], sizes = [32, 32], strides = [1, 1]} : vector<32x128xf32> to vector<32x32xf32>
    %47 = vector.extract_strided_slice %2 {offsets = [4, 0], sizes = [1, 32], strides = [1, 1]} : vector<8x32xf32> to vector<1x32xf32>
    %cst_18 = arith.constant dense<0.000000e+00> : vector<8x32xf32>
    %48 = tpu.matmul %43, %44, %cst_18 {dimension_numbers = #tpu.dot_dimension_numbers<[1], [0], [0], [1], [0, 0, 1, 1], [], []>} : vector<8x32xf32>, vector<32x32xf32>, vector<8x32xf32> -> vector<8x32xf32>
    %49 = vector.broadcast %45 : vector<1x32xf32> to vector<8x32xf32>
    %50 = arith.addf %48, %49 : vector<8x32xf32>
    %cst_19 = arith.constant 0.000000e+00 : f32
    %51 = vector.broadcast %cst_19 : f32 to vector<8x32xf32>
    %52 = arith.maximumf %50, %51 : vector<8x32xf32>
    %cst_20 = arith.constant dense<0.000000e+00> : vector<8x32xf32>
    %53 = tpu.matmul %52, %46, %cst_20 {dimension_numbers = #tpu.dot_dimension_numbers<[1], [0], [0], [1], [0, 0, 1, 1], [], []>} : vector<8x32xf32>, vector<32x32xf32>, vector<8x32xf32> -> vector<8x32xf32>
    %54 = vector.broadcast %47 : vector<1x32xf32> to vector<8x32xf32>
    %55 = arith.addf %53, %54 : vector<8x32xf32>
    %cst_21 = arith.constant 0.000000e+00 : f32
    %56 = vector.broadcast %cst_21 : f32 to vector<8x32xf32>
    %57 = arith.maximumf %55, %56 : vector<8x32xf32>
    %58 = arith.addf %57, %43 : vector<8x32xf32>
    %59 = vector.extract_strided_slice %2 {offsets = [5, 0], sizes = [1, 32], strides = [1, 1]} : vector<8x32xf32> to vector<1x32xf32>
    %60 = vector.shape_cast %59 : vector<1x32xf32> to vector<1x32xf32>
    %61 = vector.broadcast %60 : vector<1x32xf32> to vector<8x32xf32>
    %62 = vector.extract_strided_slice %2 {offsets = [6, 0], sizes = [1, 1], strides = [1, 1]} : vector<8x32xf32> to vector<1x1xf32>
    %cst_22 = arith.constant dense<0.000000e+00> : vector<8x8xf32>
    %63 = tpu.matmul %61, %58, %cst_22 {dimension_numbers = #tpu.dot_dimension_numbers<[1], [1], [0], [0], [0, 0, 1, 0], [], []>} : vector<8x32xf32>, vector<8x32xf32>, vector<8x8xf32> -> vector<8x8xf32>
    %64 = vector.extract_strided_slice %63 {offsets = [0, 0], sizes = [1, 8], strides = [1, 1]} : vector<8x8xf32> to vector<1x8xf32>
    %65 = vector.broadcast %62 : vector<1x1xf32> to vector<1x8xf32>
    %66 = arith.addf %64, %65 : vector<1x8xf32>
    %c0_23 = arith.constant 0 : index
    %c0_24 = arith.constant 0 : index
    %67 = vector.load %arg5[%c0_23, %c0_24] : memref<1x8xf32, #tpu.memory_space<vmem>>, vector<1x8xf32>
    tpu.vector_store %arg5[%c0_23, %c0_24], %66 {strides = array<i32>} : memref<1x8xf32, #tpu.memory_space<vmem>>, vector<1x8xf32>,
    return
  }
  func.func @transform_0(%arg0: i32) -> (i32, i32) {
    %c0_i32 = arith.constant 0 : i32
    %c0_i32_0 = arith.constant 0 : i32
    return %arg0, %c0_i32 : i32, i32
  }
  func.func @transform_1(%arg0: i32) -> (i32, i32, i32) {
    %c0_i32 = arith.constant 0 : i32
    %c0_i32_0 = arith.constant 0 : i32
    %c0_i32_1 = arith.constant 0 : i32
    %c0_i32_2 = arith.constant 0 : i32
    return %c0_i32, %c0_i32_0, %c0_i32_1 : i32, i32, i32
  }
  func.func @transform_2(%arg0: i32) -> (i32, i32) {
    %c0_i32 = arith.constant 0 : i32
    %c0_i32_0 = arith.constant 0 : i32
    %c0_i32_1 = arith.constant 0 : i32
    return %c0_i32, %c0_i32_0 : i32, i32
  }
  func.func @transform_3(%arg0: i32) -> (i32, i32) {
    %c0_i32 = arith.constant 0 : i32
    %c0_i32_0 = arith.constant 0 : i32
    %c0_i32_1 = arith.constant 0 : i32
    return %c0_i32, %c0_i32_0 : i32, i32
  }
  func.func @transform_4(%arg0: i32) -> (i32, i32) {
    %c0_i32 = arith.constant 0 : i32
    %c0_i32_0 = arith.constant 0 : i32
    return %c0_i32, %arg0 : i32, i32
  }
}

</mosaic_0001>

<bundles_post_ra>
// kernel: critic_forward_batched.1
= control target key start
LH: loop header
LB: loop body
LE: loop exit
PB: predicated region body
PF: predicated region fallthrough
CT: control target
= control target key end

     0   :  { %9 = vsyncpa [#allocation3], 0  ;;  %s618_s0 = inlined_call_operand.hbm [shape: s32[8,8], index: 0, kind: input, shape index: {}]   ;;  %s619_s1 = inlined_call_operand.hbm [shape: f32[3,8,32], index: 1, kind: input, shape index: {}]   ;;  %s620_s2 = inlined_call_operand.hbm [shape: f32[32,128], index: 2, kind: input, shape index: {}]   ;;  %s621_s3 = inlined_call_operand.hbm [shape: f32[8,32], index: 3, kind: input, shape index: {}]   ;;  %s622_s4 = inlined_call_operand.hbm [shape: f32[1,8], index: 4, kind: output, shape index: {}]  }
   0x1   :  { %10 = vsyncpa [#allocation6], 0 }
   0x2   :  { %11 = vsyncpa [#allocation9], 0  ;;  %s28_s17 = sshll.u32 %s619_s1, 4  ;;  %s29_s17 = int_to_ptr.hbm [resolvable:$true] %s28_s17 }
   0x3   :  { %12 = vsyncpa [#allocation4], 0  ;;  %s551_s18 = smov [#allocation5]   ;;  %s18_s22 = sshll.u32 %s618_s0, 4  ;;  %s19_s22 = int_to_ptr.hbm [resolvable:$true] %s18_s22 }
   0x4   :  { %s30_s19 = sshll.u32 %s551_s18, 4  ;;  %s552_s23 = smov 128   ;;  %s31_s19 = int_to_ptr.vmem [resolvable:$true] %s30_s19 }
   0x5   :  { %s553_s24 = smov 8   ;;  %s554_s25 = smov [#allocation2]  }
   0x6   :  { %36 = dma.hbm_to_vmem [thread:$0]  %s29_s17, 384, %s31_s19, [#allocation6], %s552_s23, %s552_s23, %s553_s24  }
   0x7   :  { %s20_s26 = sshll.u32 %s554_s25, 4  ;;  %s41_s29 = sshll.u32 %s620_s2, 4  ;;  %s21_s26 = int_to_ptr.vmem [resolvable:$true] %s20_s26  ;;  %s42_s29 = int_to_ptr.hbm [resolvable:$true] %s41_s29 }
   0x8   :  { %23 = dma.hbm_to_vmem [thread:$0]  %s19_s22, 128, %s21_s26, [#allocation3]  }
   0x9   :  { %s55_s5 = sshll.u32 %s621_s3, 4  ;;  %s555_s6 = smov [#allocation7]   ;;  %s56_s5 = int_to_ptr.hbm [resolvable:$true] %s55_s5 }
   0xa   :  { %s43_s7 = sshll.u32 %s555_s6, 4  ;;  %s556_s0 = smov [#allocation8]   ;;  %s44_s7 = int_to_ptr.vmem [resolvable:$true] %s43_s7 }
   0xb   :  { %49 = dma.hbm_to_vmem [thread:$0]  %s42_s29, 512, %s44_s7, [#allocation6], %s552_s23, %s552_s23, %s553_s24  }
   0xc   :  { %s57_s8 = sshll.u32 %s556_s0, 4  ;;  %s58_s8 = int_to_ptr.vmem [resolvable:$true] %s57_s8 }
   0xd   :  { %60 = dma.hbm_to_vmem [thread:$0]  %s56_s5, 128, %s58_s8, [#allocation9]  }
   0xe   :  { %543 = dma.done.wait [#allocation3], 128  }
   0xf   :  { %544 = vsyncadd [#allocation3], 4294967168 }
  0x10   :  { %545 = dma.done.wait [#allocation6], 896  }
  0x11   :  { %546 = vsyncadd [#allocation6], 4294966400 }
  0x12   :  { %547 = dma.done.wait [#allocation9], 128  }
  0x13   :  { %548 = vsyncadd [#allocation9], 4294967168  ;;  %v143_v0 = vld [vmem:[#allocation5 + $0x10] sm:$0xff]  ;;  %v77_v1 = vld [vmem:[#allocation2] sm:$0xff]  ;;  %vm92_vm0 = vcmask 64512   ;;  %v557_v4 = vmov 0.0  }
  0x14   :  { %v91_v2 = vld [vmem:[#allocation5 + $0x8] sm:$0xff]  ;;  %162 = vmatpush.msra.mxu2 %v143_v0  ;;  %vm139_vm1 = vcmp.eq.s32.totalorder %v77_v1, 2  ;;  %v86_v3 = vld [vmem:[#allocation5] sm:$0xff]  ;;  %vm87_vm2 = vcmp.eq.s32.totalorder %v77_v1, 1  ;;  %vm83_vm3 = vcmp.eq.s32.totalorder %v77_v1, 0  ;;  %v81_v8 = vld [vmem:[#allocation7 + $0x18] sm:$0xff] }
  0x15   :  { %111 = vmatpush.msra.mxu0 %v91_v2  ;;  %v372_v5 = vsel %vm139_vm1, 1.0, %v557_v4  ;;  %134 = vmatpush.msra.mxu1 %v86_v3  ;;  %v369_v6 = vsel %vm87_vm2, 1.0, %v557_v4  ;;  %v368_v7 = vsel %vm83_vm3, 1.0, %v557_v4  ;;  %v80_v9 = vld [vmem:[#allocation7 + $0x10] sm:$0xff]  ;;  %v79_v10 = vld [vmem:[#allocation7 + $0x8] sm:$0xff]  ;;  %v78_v11 = vld [vmem:[#allocation7] sm:$0xff] }
  0x16   :  { %373 = vmatmul.msk.f32.vlgmr.msra.gmra.mxu2 %vm92_vm0, %v372_v5  ;;  %370 = vmatmul.msk.f32.vlgmr.msra.gmra.mxu0 %vm92_vm0, %v369_v6  ;;  %v392_v12 = vpack.i.bf16 %v80_v9, %v81_v8  ;;  %s558_s2 = smov 96   ;;  %v397_v13 = vpack.i.bf16 %v78_v11, %v79_v10  ;;  %v600_v16 = vld [vmem:[#allocation8] sm:$0xff]  ;;  %vm171_vm4 = vcmask 261120   ;;  %s559_s3 = smov 64   ;;  %v561_v53 = vmov 0  }
  0x17   :  { %371 = vmatmul.msk.f32.vlgmr.msra.gmra.mxu1 %vm92_vm0, %v368_v7  ;;  %187 = vmatpush.msra.mxu3 %v81_v8  ;;  %v168_v18 = vperm.slane %v600_v16, 0  ;;  %v170_v28 = vperm.slane %v600_v16, 1  ;;  %s560_s9 = smov 32   ;;  %v196_v38 = vperm.slane %v600_v16, 2  ;;  %v238_v49 = vperm.slane %v600_v16, 3  ;;  %s562_s10 = smov [#allocation10]  }
  0x18   :  { %393 = vrot.lane.b32.xlu0 %v392_v12, %s558_s2  ;;  %403 = vrot.lane.b32.xlu1 %v392_v12, %s559_s3  ;;  %v275_v54 = vperm.slane %v600_v16, 4  ;;  %v313_v59 = vperm.slane %v600_v16, 5  ;;  %s354_s11 = sshll.u32 %s562_s10, 4  ;;  %s356_s14 = sshll.u32 %s622_s4, 4  ;;  %vm347_vm5 = vcmask 57344   ;;  %s355_s11 = int_to_ptr.vmem [resolvable:$true] %s354_s11  ;;  %s357_s14 = int_to_ptr.hbm [resolvable:$true] %s356_s14 }
  0x19   :  { %188 = vmatpush.msra.mxu3 %v80_v9  ;;  %413 = vrot.lane.b32.xlu2 %v392_v12, %s560_s9 }
  0x1a   :  { %422 = vset.pattern.permute.xlu0 %v561_v53 }
  0x1b   :  { %189 = vmatpush.msra.mxu3 %v79_v10 }
  0x1d   :  { %190 = vmatpush.msra.mxu3 %v78_v11 }
  0x20   :  { %398 = vrot.lane.b32.xlu0 %v397_v13, %s558_s2  ;;  %408 = vrot.lane.b32.xlu1 %v397_v13, %s559_s3 }
  0x21   :  { %418 = vrot.lane.b32.xlu2 %v397_v13, %s560_s9 }
  0x28   :  { %342 = vperm.xlu0 %422, %v600_v16  }
  0x73   :  { %v414_v43 = vpop.permute.xlu2 %413 }
  0x74   :  { %v415_v44 = vunpack.i.l.bf16 %v414_v43  ;;  %v416_v45 = vunpack.i.h.bf16 %v414_v43 }
  0x76   :  { %303 = vmatpush.msrb.mxu2 %v415_v44 }
  0x78   :  { %304 = vmatpush.msrb.mxu2 %v416_v45 }
  0x7b   :  { %v419_v46 = vpop.permute.xlu2 %418 }
  0x7c   :  { %v421_v47 = vunpack.i.h.bf16 %v419_v46  ;;  %v420_v48 = vunpack.i.l.bf16 %v419_v46 }
  0x7e   :  { %305 = vmatpush.msrb.mxu2 %v420_v48 }
  0x80   :  { %306 = vmatpush.msrb.mxu2 %v421_v47 }
  0x8a   :  { %v394_v22 = vpop.permute.xlu0 %393  ;;  %v404_v32 = vpop.permute.xlu1 %403 }
  0x8b   :  { %v395_v23 = vunpack.i.l.bf16 %v394_v22  ;;  %v396_v24 = vunpack.i.h.bf16 %v394_v22  ;;  %v405_v33 = vunpack.i.l.bf16 %v404_v32  ;;  %v406_v34 = vunpack.i.h.bf16 %v404_v32 }
  0x8d   :  { %228 = vmatpush.msrb.mxu0 %v395_v23  ;;  %266 = vmatpush.msrb.mxu1 %v405_v33 }
  0x8f   :  { %229 = vmatpush.msrb.mxu0 %v396_v24  ;;  %267 = vmatpush.msrb.mxu1 %v406_v34 }
  0x92   :  { %v399_v25 = vpop.permute.xlu0 %398  ;;  %v409_v35 = vpop.permute.xlu1 %408 }
  0x93   :  { %v113_v14 = vpop.f32.mrf.mxu0  ;;  %v400_v26 = vunpack.i.l.bf16 %v399_v25  ;;  %v401_v27 = vunpack.i.h.bf16 %v399_v25  ;;  %v411_v36 = vunpack.i.h.bf16 %v409_v35  ;;  %v410_v37 = vunpack.i.l.bf16 %v409_v35 }
  0x94   :  { %v136_v15 = vpop.f32.mrf.mxu1 }
  0x95   :  { %v137_v17 = vadd.f32 %v136_v15, %v113_v14  ;;  %230 = vmatpush.msrb.mxu0 %v400_v26  ;;  %268 = vmatpush.msrb.mxu1 %v410_v37 }
  0x97   :  { %231 = vmatpush.msrb.mxu0 %v401_v27  ;;  %269 = vmatpush.msrb.mxu1 %v411_v36 }
  0x99   :  { %v164_v19 = vpop.f32.mrf.mxu2 }
  0x9a   :  { %v167_v20 = vadd.f32 %v164_v19, %v137_v17  ;;  %v343_v60 = vpop.permute.xlu0 %342 }
  0x9b   :  { %v344_v61 = vrot.slane %v343_v60, 6 }
  0x9c   :  { %v169_v21 = vadd.f32 %v168_v18, %v167_v20 }
  0x9e   :  { %374 = vmatmul.msk.f32.vlgmr.msra.gmra.mxu3 %vm171_vm4, %v169_v21 }
 0x121   :  { %v192_v29 = vpop.f32.mrf.mxu3 }
 0x122   :  { %v193_v30 = vadd.f32 %v192_v29, %v170_v28 }
 0x124   :  { %v195_v31 = vmax.f32 %v193_v30, 0.0 }
 0x126   :  { %375 = vmatmul.msk.f32.vlgmr.msrb.gmra.mxu0 %vm171_vm4, %v195_v31 }
 0x1a3   :  { %v233_v39 = vpop.f32.mrf.mxu0 }
 0x1a4   :  { %v234_v40 = vadd.f32 %v233_v39, %v196_v38 }
 0x1a6   :  { %v236_v41 = vmax.f32 %v234_v40, 0.0 }
 0x1a8   :  { %v237_v42 = vadd.f32 %v236_v41, %v169_v21 }
 0x1aa   :  { %376 = vmatmul.msk.f32.vlgmr.msrb.gmra.mxu1 %vm171_vm4, %v237_v42 }
 0x227   :  { %v271_v50 = vpop.f32.mrf.mxu1 }
 0x228   :  { %v272_v51 = vadd.f32 %v271_v50, %v238_v49 }
 0x22a   :  { %v274_v52 = vmax.f32 %v272_v51, 0.0 }
 0x22c   :  { %377 = vmatmul.msk.f32.vlgmr.msrb.gmra.mxu2 %vm171_vm4, %v274_v52 }
 0x2af   :  { %v308_v55 = vpop.f32.mrf.mxu2 }
 0x2b0   :  { %v309_v56 = vadd.f32 %v308_v55, %v275_v54 }
 0x2b2   :  { %v311_v57 = vmax.f32 %v309_v56, 0.0 }
 0x2b4   :  { %v312_v58 = vadd.f32 %v311_v57, %v237_v42 }
 0x2b6   :  { %378 = vmatpush.xpose.msk.msrb.mxu3 %vm171_vm4, %v312_v58 }
 0x2b9   :  { %379 = vmatmul.msk.f32.vlgmr.msrb.gmra.mxu3 %vm171_vm4, %v313_v59 }
 0x33c   :  { %v337_v62 = vpop.f32.mrf.mxu3 }
 0x33d   :  { %v346_v63 = vadd.f32 %v344_v61, %v337_v62 }
 0x33f   :  { %348 = vst.msk [vmem:[#allocation10] sm:$0x1] %vm347_vm5, %v346_v63 }
 0x340   :  { %359 = dma.vmem_to_hbm [thread:$0]  %s355_s11, 16, %s357_s14, [#allocation4]  }
 0x341   :  { %549 = dma.done.wait [#allocation4], 16  }
 0x342   :  { %550 = vsyncadd [#allocation4], 4294967280 }
 0x343   :  { %364 = vsyncpa [#allocation3], 1 }
 0x344   :  { %365 = vsyncpa [#allocation6], 1 }
 0x345   :  { %366 = vsyncpa [#allocation9], 1 }
 0x346   :  { %367 = vsyncpa [#allocation4], 1 }

</bundles_post_ra>
